<compile_context>
chip_gen: v5e
topology: v5e:2x2
jax: 0.10.0
libtpu: 0.0.40
codegen_flags: <defaults>
</compile_context>

<pallas_src>
import numpy as np
import jax
import jax.numpy as jnp
from jax.experimental import pallas as pl
from jax.experimental.pallas import tpu as pltpu


def rnn_recurrence_kernel(z_ref, whh_hbm, h0_ref, y_ref,
                          h_scratch, whh_vmem, whh_sem):
    """Serial tanh-RNN recurrence over one (batch block, time chunk).

    z_ref:     (TB, TC, H_pad)  precomputed x@W_ih^T + (b_ih+b_hh), compute dtype
    whh_hbm:   (H_pad, H_pad)   W_hh^T, raw (ANY/HBM) ref — DMA'd once
    h0_ref:    (TB, 1, H_pad)   initial hidden state (f32, padded)
    y_ref:     (TB, TC, H_pad)  hidden states for this chunk (batch_first)
    h_scratch: (TB, H_pad) f32  carried hidden state across time chunks
    whh_vmem:  (H_pad, H_pad)   resident VMEM copy of W_hh^T (compute dtype)
    whh_sem:   DMA semaphore for the one-time W_hh copy
    """
    t = pl.program_id(1)  # time-chunk index (axis 1 of the grid)

    @pl.when(t == 0)
    def _():
        # Load W_hh^T once per batch block (per core); it stays resident in
        # the scratch for every later time chunk — no double buffering.
        cp = pltpu.make_async_copy(whh_hbm, whh_vmem, whh_sem)
        cp.start()
        cp.wait()
        # (Re-)initialize the carried hidden state at the start of a sequence.
        h_scratch[...] = h0_ref[:, 0, :].astype(jnp.float32)

    whh = whh_vmem[...]          # (H_pad, H_pad) compute dtype, hoisted
    h = h_scratch[...]           # (TB, H_pad) f32 carried state

    tc = z_ref.shape[1]          # static chunk length (unrolled)
    for s in range(tc):
        # Per-step z load rides spare vld slots and keeps vreg pressure low.
        z_t = z_ref[:, s, :].astype(jnp.float32)
        pre = z_t + jnp.dot(h.astype(whh.dtype), whh,
                            preferred_element_type=jnp.float32)
        h = jnp.tanh(pre)                       # f32 tanh (v5e-safe)
        y_ref[:, s, :] = h.astype(y_ref.dtype)  # lane-dense (H_pad) store

    h_scratch[...] = h


def rnn_encoder_forward(x, h0, w_ih, w_hh, b_ih, b_hh, *,
                        time_chunk=32, compute_dtype=jnp.bfloat16):
    """x: (B, T, I) batch_first; h0: (num_layers=1, B, H).
    Returns (out, h_n) exactly like the PyTorch module's forward."""
    B, T, I = x.shape
    H = w_ih.shape[0]
    f32 = jnp.float32

    # Lane-dense hidden dim (multiple of 128).
    H_pad = max(128, ((H + 127) // 128) * 128)

    # Time chunking: TC must stay a multiple of 8 (second-to-last block dim).
    TC = min(time_chunk, T)
    TC = ((TC + 7) // 8) * 8
    T_pad = ((T + TC - 1) // TC) * TC

    # Batch blocking: split into (up to) 2 shards so v7x megacore can run one
    # shard per TensorCore.  TB is only the leading block dim (unconstrained).
    nb = 2 if B >= 2 else 1
    TB = (B + nb - 1) // nb
    B_pad = TB * nb

    # Zero-padded parameters: padded hidden columns stay exactly 0 through the
    # recurrence, so results are unchanged by the padding.
    wih_t = jnp.zeros((I, H_pad), f32).at[:, :H].set(w_ih.T.astype(f32))
    whh_t = (jnp.zeros((H_pad, H_pad), f32)
             .at[:H, :H].set(w_hh.T.astype(f32))).astype(compute_dtype)
    bias = jnp.zeros((H_pad,), f32).at[:H].set((b_ih + b_hh).astype(f32))
    h0_pad = jnp.zeros((B_pad, 1, H_pad), f32).at[:B, 0, :H].set(h0[0].astype(f32))

    # Pad the (small) x along T/B *before* the projection GEMM — avoids a full
    # HBM round trip of the much larger z tensor through jnp.pad.
    x_p = x.astype(f32)
    if (T_pad != T) or (B_pad != B):
        x_p = jnp.pad(x_p, ((0, B_pad - B), (0, T_pad - T), (0, 0)))

    # Hoisted, time-parallel input projection (one big MXU GEMM), bias folded
    # in; stored in compute_dtype (bf16 by default) to halve the HBM stream.
    z = (jnp.dot(x_p.reshape(B_pad * T_pad, I), wih_t,
                 preferred_element_type=f32) + bias)
    z = z.reshape(B_pad, T_pad, H_pad).astype(compute_dtype)

    out_dtype = x.dtype

    # Explicit VMEM budget from the actual block sizes (+ headroom).
    csz = jnp.dtype(compute_dtype).itemsize
    osz = jnp.dtype(out_dtype).itemsize
    z_blk = TB * TC * H_pad * csz
    y_blk = TB * TC * H_pad * osz
    h0_blk = TB * 1 * H_pad * 4
    whh_bytes = H_pad * H_pad * csz
    scratch_bytes = TB * H_pad * 4 + whh_bytes
    vmem_needed = 2 * (z_blk + y_blk + h0_blk) + scratch_bytes
    vmem_limit = int(min(max(2 * vmem_needed + (1 << 20), 8 << 20), 64 << 20))

    y = pl.pallas_call(
        rnn_recurrence_kernel,
        out_shape=jax.ShapeDtypeStruct((B_pad, T_pad, H_pad), out_dtype),
        grid_spec=pltpu.PrefetchScalarGridSpec(
            num_scalar_prefetch=0,
            grid=(B_pad // TB, T_pad // TC),          # (batch, time)
            in_specs=[
                pl.BlockSpec((TB, TC, H_pad), lambda b, t: (b, t, 0)),  # z chunk
                pl.BlockSpec(memory_space=pl.ANY),                       # W_hh^T (DMA'd once)
                pl.BlockSpec((TB, 1, H_pad), lambda b, t: (b, 0, 0)),    # h0
            ],
            out_specs=pl.BlockSpec((TB, TC, H_pad), lambda b, t: (b, t, 0)),
            scratch_shapes=[
                pltpu.VMEM((TB, H_pad), jnp.float32),        # carried h
                pltpu.VMEM((H_pad, H_pad), compute_dtype),   # resident W_hh^T
                pltpu.SemaphoreType.DMA(()),                 # W_hh copy sem
            ],
        ),
        compiler_params=pltpu.CompilerParams(
            dimension_semantics=("parallel", "arbitrary"),   # batch ∥, time serial
            vmem_limit_bytes=vmem_limit,
        ),
    )(z, whh_t, h0_pad)

    out = y[:B, :T, :H]                   # back to logical (B, T, H)
    h_n = out[:, T - 1, :][None, :, :]    # last hidden state, (1, B, H)
    return out, h_n


def rnn_reference(x, h0, w_ih, w_hh, b_ih, b_hh):
    """Pure-JAX reference of nn.RNN (tanh, 1 layer, batch_first)."""
    def step(h, x_t):
        h_new = jnp.tanh(x_t @ w_ih.T + b_ih + h @ w_hh.T + b_hh)
        return h_new, h_new
    h_last, ys = jax.lax.scan(step, h0[0], jnp.transpose(x, (1, 0, 2)))
    return jnp.transpose(ys, (1, 0, 2)), h_last[None, :, :]


if __name__ == "__main__":
    # Small shapes consistent with the module's forward.
    B, T, I, H = 2, 8, 16, 32
    num_layers = 1

    key = jax.random.PRNGKey(0)
    kx, kwi, kwh, kbi, kbh = jax.random.split(key, 5)

    # Deterministic parameter init mimicking nn.RNN: U(-1/sqrt(H), 1/sqrt(H)).
    bound = 1.0 / np.sqrt(H)
    w_ih = jax.random.uniform(kwi, (H, I), jnp.float32, -bound, bound)
    w_hh = jax.random.uniform(kwh, (H, H), jnp.float32, -bound, bound)
    b_ih = jax.random.uniform(kbi, (H,), jnp.float32, -bound, bound)
    b_hh = jax.random.uniform(kbh, (H,), jnp.float32, -bound, bound)

    x = jax.random.normal(kx, (B, T, I), jnp.float32)
    h0 = jnp.zeros((num_layers, B, H), jnp.float32)

    out_ref, h_n_ref = rnn_reference(x, h0, w_ih, w_hh, b_ih, b_hh)

    # Fast path: bf16 matmul operands + bf16 z stream (bf16-level tolerance).
    out, h_n = rnn_encoder_forward(x, h0, w_ih, w_hh, b_ih, b_hh,
                                   compute_dtype=jnp.bfloat16)
    out = jax.block_until_ready(out)
    h_n = jax.block_until_ready(h_n)
    assert out.shape == (B, T, H) and h_n.shape == (num_layers, B, H)
    np.testing.assert_allclose(np.asarray(out), np.asarray(out_ref),
                               rtol=2e-2, atol=2e-2)
    np.testing.assert_allclose(np.asarray(h_n), np.asarray(h_n_ref),
                               rtol=2e-2, atol=2e-2)

    # Exact-semantics path: f32 everywhere, tight tolerance.
    out32, h_n32 = rnn_encoder_forward(x, h0, w_ih, w_hh, b_ih, b_hh,
                                       compute_dtype=jnp.float32)
    out32 = jax.block_until_ready(out32)
    h_n32 = jax.block_until_ready(h_n32)
    np.testing.assert_allclose(np.asarray(out32), np.asarray(out_ref),
                               rtol=1e-5, atol=1e-5)
    np.testing.assert_allclose(np.asarray(h_n32), np.asarray(h_n_ref),
                               rtol=1e-5, atol=1e-5)

    print("KERNEL_OK")
</pallas_src>

<mosaic_0001>
module attributes {stable_mosaic.version = 11 : i64} {
  func.func @rnn_recurrence_kernel(%arg0: i32, %arg1: i32, %arg2: memref<1x8x128xbf16, #tpu.memory_space<vmem>>, %arg3: memref<128x128xbf16, #tpu.memory_space<any>>, %arg4: memref<1x1x128xf32, #tpu.memory_space<vmem>>, %arg5: memref<1x8x128xf32, #tpu.memory_space<vmem>>, %arg6: memref<1x128xf32, #tpu.memory_space<vmem>>, %arg7: memref<128x128xbf16, #tpu.memory_space<vmem>>, %arg8: memref<!tpu.dma_semaphore, #tpu.memory_space<semaphore_mem>>) attributes {dimension_semantics = [#tpu.dimension_semantics<parallel>, #tpu.dimension_semantics<arbitrary>], iteration_bounds = array<i64: 2, 1>, scalar_prefetch = 0 : i64, scratch_operands = 3 : i64, tpu.core_type = #tpu.core_type<tc>, window_params = [{transform_indices = @transform_0, window_bounds = array<i64: 1, 8, 128>}, {}, {transform_indices = @transform_2, window_bounds = array<i64: 1, 1, 128>}, {transform_indices = @transform_3, window_bounds = array<i64: 1, 8, 128>}]} {
    %c0_i32 = arith.constant 0 : i32
    %0 = arith.cmpi eq, %arg1, %c0_i32 : i32
    %1 = arith.extui %0 : i1 to i32
    %c0_i32_0 = arith.constant 0 : i32
    %2 = arith.cmpi ne, %1, %c0_i32_0 : i32
    scf.if %2 {
      tpu.enqueue_dma source(%arg3 : memref<128x128xbf16, #tpu.memory_space<any>>) target(%arg7 : memref<128x128xbf16, #tpu.memory_space<vmem>>) target_semaphore(%arg8 : memref<!tpu.dma_semaphore, #tpu.memory_space<semaphore_mem>>)
      tpu.wait_dma2 semaphore(%arg8 : memref<!tpu.dma_semaphore, #tpu.memory_space<semaphore_mem>>) src(%arg3 : memref<128x128xbf16, #tpu.memory_space<any>>) dst(%arg7 : memref<128x128xbf16, #tpu.memory_space<vmem>>)
      %c0_54 = arith.constant 0 : index
      %c0_55 = arith.constant 0 : index
      %c0_56 = arith.constant 0 : index
      %86 = vector.load %arg4[%c0_54, %c0_55, %c0_56] : memref<1x1x128xf32, #tpu.memory_space<vmem>>, vector<1x1x128xf32>
      %87 = vector.shape_cast %86 : vector<1x1x128xf32> to vector<1x128xf32>
      %c0_57 = arith.constant 0 : index
      %c0_58 = arith.constant 0 : index
      %88 = vector.load %arg6[%c0_57, %c0_58] : memref<1x128xf32, #tpu.memory_space<vmem>>, vector<1x128xf32>
      tpu.vector_store %arg6[%c0_57, %c0_58], %87 {strides = array<i32>} : memref<1x128xf32, #tpu.memory_space<vmem>>, vector<1x128xf32>,
    } else {
    }
    %c0 = arith.constant 0 : index
    %c0_1 = arith.constant 0 : index
    %3 = vector.load %arg7[%c0, %c0_1] : memref<128x128xbf16, #tpu.memory_space<vmem>>, vector<128x128xbf16>
    %c0_2 = arith.constant 0 : index
    %c0_3 = arith.constant 0 : index
    %4 = vector.load %arg6[%c0_2, %c0_3] : memref<1x128xf32, #tpu.memory_space<vmem>>, vector<1x128xf32>
    %c0_4 = arith.constant 0 : index
    %c0_5 = arith.constant 0 : index
    %c0_6 = arith.constant 0 : index
    %5 = vector.load %arg2[%c0_4, %c0_5, %c0_6] : memref<1x8x128xbf16, #tpu.memory_space<vmem>>, vector<1x1x128xbf16>
    %6 = vector.shape_cast %5 : vector<1x1x128xbf16> to vector<1x128xbf16>
    %7 = arith.extf %6 : vector<1x128xbf16> to vector<1x128xf32>
    %8 = arith.truncf %4 : vector<1x128xf32> to vector<1x128xbf16>
    %cst = arith.constant dense<0.000000e+00> : vector<1x128xf32>
    %9 = tpu.matmul %8, %3, %cst {dimension_numbers = #tpu.dot_dimension_numbers<[1], [0], [0], [1], [0, 0, 1, 1], [], []>} : vector<1x128xbf16>, vector<128x128xbf16>, vector<1x128xf32> -> vector<1x128xf32>
    %10 = arith.addf %7, %9 : vector<1x128xf32>
    %11 = math.tanh %10 : vector<1x128xf32>
    %c0_7 = arith.constant 0 : index
    %c0_8 = arith.constant 0 : index
    %c0_9 = arith.constant 0 : index
    %12 = vector.load %arg5[%c0_7, %c0_8, %c0_9] : memref<1x8x128xf32, #tpu.memory_space<vmem>>, vector<1x1x128xf32>
    %13 = vector.shape_cast %12 : vector<1x1x128xf32> to vector<1x128xf32>
    %14 = vector.shape_cast %11 : vector<1x128xf32> to vector<1x1x128xf32>
    tpu.vector_store %arg5[%c0_7, %c0_8, %c0_9], %14 {strides = array<i32>} : memref<1x8x128xf32, #tpu.memory_space<vmem>>, vector<1x1x128xf32>,
    %c0_10 = arith.constant 0 : index
    %c1 = arith.constant 1 : index
    %c0_11 = arith.constant 0 : index
    %15 = vector.load %arg2[%c0_10, %c1, %c0_11] : memref<1x8x128xbf16, #tpu.memory_space<vmem>>, vector<1x1x128xbf16>
    %16 = vector.shape_cast %15 : vector<1x1x128xbf16> to vector<1x128xbf16>
    %17 = arith.extf %16 : vector<1x128xbf16> to vector<1x128xf32>
    %18 = arith.truncf %11 : vector<1x128xf32> to vector<1x128xbf16>
    %cst_12 = arith.constant dense<0.000000e+00> : vector<1x128xf32>
    %19 = tpu.matmul %18, %3, %cst_12 {dimension_numbers = #tpu.dot_dimension_numbers<[1], [0], [0], [1], [0, 0, 1, 1], [], []>} : vector<1x128xbf16>, vector<128x128xbf16>, vector<1x128xf32> -> vector<1x128xf32>
    %20 = arith.addf %17, %19 : vector<1x128xf32>
    %21 = math.tanh %20 : vector<1x128xf32>
    %c0_13 = arith.constant 0 : index
    %c1_14 = arith.constant 1 : index
    %c0_15 = arith.constant 0 : index
    %22 = vector.load %arg5[%c0_13, %c1_14, %c0_15] : memref<1x8x128xf32, #tpu.memory_space<vmem>>, vector<1x1x128xf32>
    %23 = vector.shape_cast %22 : vector<1x1x128xf32> to vector<1x128xf32>
    %24 = vector.shape_cast %21 : vector<1x128xf32> to vector<1x1x128xf32>
    tpu.vector_store %arg5[%c0_13, %c1_14, %c0_15], %24 {strides = array<i32>} : memref<1x8x128xf32, #tpu.memory_space<vmem>>, vector<1x1x128xf32>,
    %c0_16 = arith.constant 0 : index
    %c2 = arith.constant 2 : index
    %c0_17 = arith.constant 0 : index
    %25 = vector.load %arg2[%c0_16, %c2, %c0_17] : memref<1x8x128xbf16, #tpu.memory_space<vmem>>, vector<1x1x128xbf16>
    %26 = vector.shape_cast %25 : vector<1x1x128xbf16> to vector<1x128xbf16>
    %27 = arith.extf %26 : vector<1x128xbf16> to vector<1x128xf32>
    %28 = arith.truncf %21 : vector<1x128xf32> to vector<1x128xbf16>
    %cst_18 = arith.constant dense<0.000000e+00> : vector<1x128xf32>
    %29 = tpu.matmul %28, %3, %cst_18 {dimension_numbers = #tpu.dot_dimension_numbers<[1], [0], [0], [1], [0, 0, 1, 1], [], []>} : vector<1x128xbf16>, vector<128x128xbf16>, vector<1x128xf32> -> vector<1x128xf32>
    %30 = arith.addf %27, %29 : vector<1x128xf32>
    %31 = math.tanh %30 : vector<1x128xf32>
    %c0_19 = arith.constant 0 : index
    %c2_20 = arith.constant 2 : index
    %c0_21 = arith.constant 0 : index
    %32 = vector.load %arg5[%c0_19, %c2_20, %c0_21] : memref<1x8x128xf32, #tpu.memory_space<vmem>>, vector<1x1x128xf32>
    %33 = vector.shape_cast %32 : vector<1x1x128xf32> to vector<1x128xf32>
    %34 = vector.shape_cast %31 : vector<1x128xf32> to vector<1x1x128xf32>
    tpu.vector_store %arg5[%c0_19, %c2_20, %c0_21], %34 {strides = array<i32>} : memref<1x8x128xf32, #tpu.memory_space<vmem>>, vector<1x1x128xf32>,
    %c0_22 = arith.constant 0 : index
    %c3 = arith.constant 3 : index
    %c0_23 = arith.constant 0 : index
    %35 = vector.load %arg2[%c0_22, %c3, %c0_23] : memref<1x8x128xbf16, #tpu.memory_space<vmem>>, vector<1x1x128xbf16>
    %36 = vector.shape_cast %35 : vector<1x1x128xbf16> to vector<1x128xbf16>
    %37 = arith.extf %36 : vector<1x128xbf16> to vector<1x128xf32>
    %38 = arith.truncf %31 : vector<1x128xf32> to vector<1x128xbf16>
    %cst_24 = arith.constant dense<0.000000e+00> : vector<1x128xf32>
    %39 = tpu.matmul %38, %3, %cst_24 {dimension_numbers = #tpu.dot_dimension_numbers<[1], [0], [0], [1], [0, 0, 1, 1], [], []>} : vector<1x128xbf16>, vector<128x128xbf16>, vector<1x128xf32> -> vector<1x128xf32>
    %40 = arith.addf %37, %39 : vector<1x128xf32>
    %41 = math.tanh %40 : vector<1x128xf32>
    %c0_25 = arith.constant 0 : index
    %c3_26 = arith.constant 3 : index
    %c0_27 = arith.constant 0 : index
    %42 = vector.load %arg5[%c0_25, %c3_26, %c0_27] : memref<1x8x128xf32, #tpu.memory_space<vmem>>, vector<1x1x128xf32>
    %43 = vector.shape_cast %42 : vector<1x1x128xf32> to vector<1x128xf32>
    %44 = vector.shape_cast %41 : vector<1x128xf32> to vector<1x1x128xf32>
    tpu.vector_store %arg5[%c0_25, %c3_26, %c0_27], %44 {strides = array<i32>} : memref<1x8x128xf32, #tpu.memory_space<vmem>>, vector<1x1x128xf32>,
    %c0_28 = arith.constant 0 : index
    %c4 = arith.constant 4 : index
    %c0_29 = arith.constant 0 : index
    %45 = vector.load %arg2[%c0_28, %c4, %c0_29] : memref<1x8x128xbf16, #tpu.memory_space<vmem>>, vector<1x1x128xbf16>
    %46 = vector.shape_cast %45 : vector<1x1x128xbf16> to vector<1x128xbf16>
    %47 = arith.extf %46 : vector<1x128xbf16> to vector<1x128xf32>
    %48 = arith.truncf %41 : vector<1x128xf32> to vector<1x128xbf16>
    %cst_30 = arith.constant dense<0.000000e+00> : vector<1x128xf32>
    %49 = tpu.matmul %48, %3, %cst_30 {dimension_numbers = #tpu.dot_dimension_numbers<[1], [0], [0], [1], [0, 0, 1, 1], [], []>} : vector<1x128xbf16>, vector<128x128xbf16>, vector<1x128xf32> -> vector<1x128xf32>
    %50 = arith.addf %47, %49 : vector<1x128xf32>
    %51 = math.tanh %50 : vector<1x128xf32>
    %c0_31 = arith.constant 0 : index
    %c4_32 = arith.constant 4 : index
    %c0_33 = arith.constant 0 : index
    %52 = vector.load %arg5[%c0_31, %c4_32, %c0_33] : memref<1x8x128xf32, #tpu.memory_space<vmem>>, vector<1x1x128xf32>
    %53 = vector.shape_cast %52 : vector<1x1x128xf32> to vector<1x128xf32>
    %54 = vector.shape_cast %51 : vector<1x128xf32> to vector<1x1x128xf32>
    tpu.vector_store %arg5[%c0_31, %c4_32, %c0_33], %54 {strides = array<i32>} : memref<1x8x128xf32, #tpu.memory_space<vmem>>, vector<1x1x128xf32>,
    %c0_34 = arith.constant 0 : index
    %c5 = arith.constant 5 : index
    %c0_35 = arith.constant 0 : index
    %55 = vector.load %arg2[%c0_34, %c5, %c0_35] : memref<1x8x128xbf16, #tpu.memory_space<vmem>>, vector<1x1x128xbf16>
    %56 = vector.shape_cast %55 : vector<1x1x128xbf16> to vector<1x128xbf16>
    %57 = arith.extf %56 : vector<1x128xbf16> to vector<1x128xf32>
    %58 = arith.truncf %51 : vector<1x128xf32> to vector<1x128xbf16>
    %cst_36 = arith.constant dense<0.000000e+00> : vector<1x128xf32>
    %59 = tpu.matmul %58, %3, %cst_36 {dimension_numbers = #tpu.dot_dimension_numbers<[1], [0], [0], [1], [0, 0, 1, 1], [], []>} : vector<1x128xbf16>, vector<128x128xbf16>, vector<1x128xf32> -> vector<1x128xf32>
    %60 = arith.addf %57, %59 : vector<1x128xf32>
    %61 = math.tanh %60 : vector<1x128xf32>
    %c0_37 = arith.constant 0 : index
    %c5_38 = arith.constant 5 : index
    %c0_39 = arith.constant 0 : index
    %62 = vector.load %arg5[%c0_37, %c5_38, %c0_39] : memref<1x8x128xf32, #tpu.memory_space<vmem>>, vector<1x1x128xf32>
    %63 = vector.shape_cast %62 : vector<1x1x128xf32> to vector<1x128xf32>
    %64 = vector.shape_cast %61 : vector<1x128xf32> to vector<1x1x128xf32>
    tpu.vector_store %arg5[%c0_37, %c5_38, %c0_39], %64 {strides = array<i32>} : memref<1x8x128xf32, #tpu.memory_space<vmem>>, vector<1x1x128xf32>,
    %c0_40 = arith.constant 0 : index
    %c6 = arith.constant 6 : index
    %c0_41 = arith.constant 0 : index
    %65 = vector.load %arg2[%c0_40, %c6, %c0_41] : memref<1x8x128xbf16, #tpu.memory_space<vmem>>, vector<1x1x128xbf16>
    %66 = vector.shape_cast %65 : vector<1x1x128xbf16> to vector<1x128xbf16>
    %67 = arith.extf %66 : vector<1x128xbf16> to vector<1x128xf32>
    %68 = arith.truncf %61 : vector<1x128xf32> to vector<1x128xbf16>
    %cst_42 = arith.constant dense<0.000000e+00> : vector<1x128xf32>
    %69 = tpu.matmul %68, %3, %cst_42 {dimension_numbers = #tpu.dot_dimension_numbers<[1], [0], [0], [1], [0, 0, 1, 1], [], []>} : vector<1x128xbf16>, vector<128x128xbf16>, vector<1x128xf32> -> vector<1x128xf32>
    %70 = arith.addf %67, %69 : vector<1x128xf32>
    %71 = math.tanh %70 : vector<1x128xf32>
    %c0_43 = arith.constant 0 : index
    %c6_44 = arith.constant 6 : index
    %c0_45 = arith.constant 0 : index
    %72 = vector.load %arg5[%c0_43, %c6_44, %c0_45] : memref<1x8x128xf32, #tpu.memory_space<vmem>>, vector<1x1x128xf32>
    %73 = vector.shape_cast %72 : vector<1x1x128xf32> to vector<1x128xf32>
    %74 = vector.shape_cast %71 : vector<1x128xf32> to vector<1x1x128xf32>
    tpu.vector_store %arg5[%c0_43, %c6_44, %c0_45], %74 {strides = array<i32>} : memref<1x8x128xf32, #tpu.memory_space<vmem>>, vector<1x1x128xf32>,
    %c0_46 = arith.constant 0 : index
    %c7 = arith.constant 7 : index
    %c0_47 = arith.constant 0 : index
    %75 = vector.load %arg2[%c0_46, %c7, %c0_47] : memref<1x8x128xbf16, #tpu.memory_space<vmem>>, vector<1x1x128xbf16>
    %76 = vector.shape_cast %75 : vector<1x1x128xbf16> to vector<1x128xbf16>
    %77 = arith.extf %76 : vector<1x128xbf16> to vector<1x128xf32>
    %78 = arith.truncf %71 : vector<1x128xf32> to vector<1x128xbf16>
    %cst_48 = arith.constant dense<0.000000e+00> : vector<1x128xf32>
    %79 = tpu.matmul %78, %3, %cst_48 {dimension_numbers = #tpu.dot_dimension_numbers<[1], [0], [0], [1], [0, 0, 1, 1], [], []>} : vector<1x128xbf16>, vector<128x128xbf16>, vector<1x128xf32> -> vector<1x128xf32>
    %80 = arith.addf %77, %79 : vector<1x128xf32>
    %81 = math.tanh %80 : vector<1x128xf32>
    %c0_49 = arith.constant 0 : index
    %c7_50 = arith.constant 7 : index
    %c0_51 = arith.constant 0 : index
    %82 = vector.load %arg5[%c0_49, %c7_50, %c0_51] : memref<1x8x128xf32, #tpu.memory_space<vmem>>, vector<1x1x128xf32>
    %83 = vector.shape_cast %82 : vector<1x1x128xf32> to vector<1x128xf32>
    %84 = vector.shape_cast %81 : vector<1x128xf32> to vector<1x1x128xf32>
    tpu.vector_store %arg5[%c0_49, %c7_50, %c0_51], %84 {strides = array<i32>} : memref<1x8x128xf32, #tpu.memory_space<vmem>>, vector<1x1x128xf32>,
    %c0_52 = arith.constant 0 : index
    %c0_53 = arith.constant 0 : index
    %85 = vector.load %arg6[%c0_52, %c0_53] : memref<1x128xf32, #tpu.memory_space<vmem>>, vector<1x128xf32>
    tpu.vector_store %arg6[%c0_52, %c0_53], %81 {strides = array<i32>} : memref<1x128xf32, #tpu.memory_space<vmem>>, vector<1x128xf32>,
    return
  }
  func.func @transform_0(%arg0: i32, %arg1: i32) -> (i32, i32, i32) {
    %c0_i32 = arith.constant 0 : i32
    %c0_i32_0 = arith.constant 0 : i32
    return %arg0, %arg1, %c0_i32 : i32, i32, i32
  }
  func.func @transform_2(%arg0: i32, %arg1: i32) -> (i32, i32, i32) {
    %c0_i32 = arith.constant 0 : i32
    %c0_i32_0 = arith.constant 0 : i32
    %c0_i32_1 = arith.constant 0 : i32
    return %arg0, %c0_i32, %c0_i32_0 : i32, i32, i32
  }
  func.func @transform_3(%arg0: i32, %arg1: i32) -> (i32, i32, i32) {
    %c0_i32 = arith.constant 0 : i32
    %c0_i32_0 = arith.constant 0 : i32
    return %arg0, %arg1, %c0_i32 : i32, i32, i32
  }
}

</mosaic_0001>

<bundles_post_ra>
// kernel: tpu_custom_call.1
= control target key start
LH: loop header
LB: loop body
LE: loop exit
PB: predicated region body
PF: predicated region fallthrough
CT: control target
= control target key end

     0   :  { %8 = vsyncpa [#allocation6], 0  ;;  %s1109_s0 = inlined_call_operand.hbm [shape: bf16[2,8,128], index: 0, kind: input, shape index: {}]   ;;  %s1110_s1 = inlined_call_operand.hbm [shape: bf16[128,128], index: 1, kind: input, shape index: {}]   ;;  %s1111_s2 = inlined_call_operand.hbm [shape: f32[2,1,128], index: 2, kind: input, shape index: {}]   ;;  %s1112_s3 = inlined_call_operand.hbm [shape: f32[2,8,128], index: 3, kind: output, shape index: {}]  }
   0x1   :  { %10 = vsyncpa [#allocation6 + $0x1], 0 }
   0x2   :  { %11 = vsyncpa [#allocation9], 0 }
   0x3   :  { %13 = vsyncpa [#allocation9 + $0x1], 0 }
   0x4   :  { %14 = vsyncpa [#allocation7], 0 }
   0x5   :  { %16 = vsyncpa [#allocation7 + $0x1], 0  ;;  %s954_s12 = smov 0   ;;  %s956_s13 = smov 0  }
   0x6   :  { %s958_s14 = smov 0   ;;  %s960_s15 = smov 0  }
   0x7   :  { %s962_s16 = smov 0   ;;  %s964_s17 = smov 0  }
   0x8 LB: > { %s621_s18 = sadd.s32 4294967295, %s931_s17   ;;  %s622_s19 = sadd.s32 4294967294, %s931_s17   ;;  %s931_s17 = sphi %s964_s17, %s22_s17   ;;  %s927_s16 = sphi %s962_s16, %s1121_s16   ;;  %s923_s15 = sphi %s960_s15, %s1120_s15   ;;  %s919_s14 = sphi %s958_s14, %s1119_s14   ;;  %s915_s13 = sphi %s956_s13, %s1118_s13   ;;  %s911_s12 = sphi %s954_s12, %s1117_s12  }
   0x9   : > { %s34_s20 = sadd.s32 1, %s927_s16  ;;  %s43_s21 = sadd.s32 1, %s919_s14 }
   0xa   : > { %p36_p0 = scmp.ge.s32.totalorder %s34_s20, 2  ;;  %p50_p1 = scmp.ne.s32.totalorder %s919_s14, %s915_s13 }
   0xb   : > { %p51_p2 = scmp.eq.s32.totalorder %s931_s17, 0  ;;  %p56_p3 = scmp.ne.s32.totalorder %s915_s13, %s911_s12 }
   0xc   : > { %s1123_s20 = smov (%p36_p0, %s34_s20), 0  ;;  %p57_p5 = scmp.eq.s32.totalorder %s621_s18, 0 }
   0xd   : > { %p995_p4 = por %p51_p2, %p50_p1  ;;  %s38_s23 = ssub.s32 %s927_s16, %s1123_s20 }
   0xe   : > { %p108_p6 = scmp.eq.s32.totalorder %s621_s18, 1  ;;  %p41_p7 = scmp.eq.s32.totalorder %s38_s23, 0 }
   0xf   : > { %p1001_p8 = por %p57_p5, %p56_p3  ;;  %p114_p10 = scmp.eq.s32.totalorder %s622_s19, 1 }
  0x10   : > { %p1005_p9 = por %p108_p6, %p50_p1  ;;  %p624_p12 = scmp.ge.s32.totalorder %s931_s17, 2 }
  0x11   : > { %s1010_s26 = scalar_select %p41_p7, %s919_s14, %s43_s21  }
  0x12   : > { %p1012_p11 = por %p114_p10, %p56_p3  ;;  %p692_p13 = scmp.lt.s32.totalorder %s931_s17, 2 }
  0x13   : > { %s134_s28 = sand.u32 1, %s919_s14   ;;  %s626_s30 = sshll.u32 %s927_s16, 2 }
  0x14   : > { %s625_s29 = sshll.u32 %s134_s28, 2  ;;  %s143_s6 = scalar_lea.hbm %s1109_s0, %s626_s30 }
  0x15   : > { %s138_s7 = scalar_lea.vmem [#allocation5], %s625_s29  ;;  %s145_s9 = sshll.u32 %s143_s6, 4  ;;  %s146_s9 = int_to_ptr.hbm [resolvable:$true] %s145_s9 }
  0x16   : > { %s147_s8 = sshll.u32 %s138_s7, 4  ;;  %p682_p0 = pnand %p692_p13, %p995_p4  ;;  %s148_s8 = int_to_ptr.vmem [resolvable:$true] %s147_s8 }
  0x17   : > { %p627_p1 = scmp.ge.s32.totalorder %s931_s17, 1  ;;  %p169_p2 = scmp.lt.s32.totalorder %s931_s17, 3 }
  0x18   : > { %s135_s10 = scalar_lea.sflag [#allocation6], %s134_s28  ;;  %s160_s19 = scalar_lea.hbm %s1111_s2, %s927_s16 }
  0x19   : > { %684 = dma.hbm_to_vmem [thread:$0]  (!%p682_p0), %s146_s9, 64, %s148_s8, %s135_s10  }
  0x1a   : > { %p170_p3 = pnand %p627_p1, %p169_p2  ;;  %s157_s21 = scalar_lea.vmem [#allocation8], %s134_s28 }
  0x1b   : > { %s164_s23 = sshll.u32 %s157_s21, 4  ;;  %s162_s4 = sshll.u32 %s160_s19, 4  ;;  %s165_s23 = int_to_ptr.vmem [resolvable:$true] %s164_s23  ;;  %s163_s4 = int_to_ptr.hbm [resolvable:$true] %s162_s4 }
  0x1c   : > { %s155_s29 = scalar_lea.sflag [#allocation9], %s134_s28  ;;  %173 = sbr.rel (%p170_p3) target bundleno = 1225 (0x4c9), region = 28 }
  0x1d   : > { %687 = dma.hbm_to_vmem [thread:$0]  (!%p682_p0), %s163_s4, 16, %s165_s23, %s155_s29  }
  0x1e   : > { %s1032_s22 = sand.u32 (!%p170_p3), 1, %s915_s13  }
  0x1f   : > { %s628_s30 = sshll.u32 (!%p170_p3), %s1032_s22, 2  ;;  %s176_s5 = scalar_lea.sflag (!%p170_p3), [#allocation6], %s1032_s22 }
  0x20   : > { %s1036_s6 = scalar_lea.vmem (!%p170_p3), [#allocation5], %s628_s30 }
  0x21   : > { %896 = dma.done.wait (%p1001_p8), %s176_s5, 64  }
  0x22   : > { %898 = vsyncadd (%p1001_p8), %s176_s5, 4294967232  ;;  %s186_s28 = scalar_lea.sflag [#allocation9], %s1032_s22  ;;  %s188_s7 = scalar_lea.vmem [#allocation8], %s1032_s22 }
  0x23   : > { %900 = dma.done.wait (%p1001_p8), %s186_s28, 16  }
  0x24   : > { %902 = vsyncadd (%p1001_p8), %s186_s28, 4294967280  ;;  %s629_s8 = sshll.u32 %s1032_s22, 3  ;;  %s225_s11 = sshll.u32 %s1110_s1, 4  ;;  %s226_s11 = int_to_ptr.hbm [resolvable:$true] %s225_s11 }
  0x25   : > { %s933_s18 = smov [#allocation3]   ;;  %s1052_s21 = scalar_lea.vmem [#allocation10], %s629_s8 }
  0x26   : > { %s227_s19 = sshll.u32 %s933_s18, 4  ;;  %s228_s19 = int_to_ptr.vmem [resolvable:$true] %s227_s19 }
  0x27   : > { %230 = dma.hbm_to_vmem [thread:$0]  %s226_s11, 1024, %s228_s19, [#allocation4] }
  0x28   : > { %903 = dma.done.wait [#allocation4], 1024 }
  0x29   : > { %904 = vsyncadd [#allocation4], 4294966272  ;;  %v674_v0 = vld [vmem:[#allocation3 + $0x38] sm:$0xff]  ;;  %v673_v1 = vld [vmem:[#allocation3 + $0x30] sm:$0xff]  ;;  %s663_s24 = sshll.u32 %s923_s15, 3  ;;  %s513_s30 = sshll.u32 %s1052_s21, 4  ;;  %s514_s30 = int_to_ptr.vmem [resolvable:$true] %s513_s30 }
  0x2a   : > { %305 = vmatpush.bf16.msra.mxu0 %v674_v0  ;;  %v235_v2 = vld [vmem:[%s188_s7] sm:$0x1]  ;;  %324 = vmatpush.bf16.msra.mxu1 %v674_v0  ;;  %v672_v3 = vld [vmem:[#allocation3 + $0x28] sm:$0xff]  ;;  %v671_v4 = vld [vmem:[#allocation3 + $0x20] sm:$0xff]  ;;  %s511_s29 = scalar_lea.hbm %s1112_s3, %s663_s24  ;;  %s863_s9 = scalar_lea.hbm %s1112_s3, 16 }
  0x2b   : > { %236 = vst [vmem:[#allocation2] sm:$0x1] %v235_v2  ;;  %350 = vmatpush.bf16.msra.mxu2 %v674_v0  ;;  %375 = vmatpush.bf16.msra.mxu3 %v674_v0  ;;  %v670_v5 = vld [vmem:[#allocation3 + $0x18] sm:$0xff]  ;;  %v669_v6 = vld [vmem:[#allocation3 + $0x10] sm:$0xff]  ;;  %v668_v7 = vld [vmem:[#allocation3 + $0x8] sm:$0xff]  ;;  %s515_s5 = sshll.u32 %s511_s29, 4  ;;  %s516_s5 = int_to_ptr.hbm [resolvable:$true] %s515_s5 }
  0x2c   : > { %v667_v8 = vld [vmem:[#allocation3] sm:$0xff]  ;;  %s857_s28 = sshra.s32 %s516_s5, 4  ;;  %s858_s28 = int_to_ptr.hbm [resolvable:$true] %s857_s28 }
  0x2d   : > { %v254_v11 = vld [vmem:[%s1036_s6] sm:$0x1]  ;;  %v343_v27 = vld [vmem:[%s1036_s6] sm:$0x2]  ;;  %v394_v46 = vld [vmem:[%s1036_s6] sm:$0x4]  ;;  %p864_p7 = scmp.lt.s32.totalorder %s858_s28, %s1112_s3 }
  0x2e   : > { %306 = vmatpush.bf16.msra.mxu0 %v673_v1  ;;  %325 = vmatpush.bf16.msra.mxu1 %v673_v1  ;;  %v255_v12 = vunpack.c.l.bf16 %v254_v11  ;;  %v321_v18 = vld [vmem:[%s1036_s6] sm:$0x1]  ;;  %v344_v28 = vunpack.c.l.bf16 %v343_v27  ;;  %v369_v36 = vld [vmem:[%s1036_s6] sm:$0x2]  ;;  %v395_v47 = vunpack.c.l.bf16 %v394_v46  ;;  %v421_v55 = vld [vmem:[%s1036_s6] sm:$0x4] }
  0x2f   : > { %351 = vmatpush.bf16.msra.mxu2 %v673_v1  ;;  %376 = vmatpush.bf16.msra.mxu3 %v673_v1  ;;  %v322_v19 = vunpack.c.l.bf16 %v321_v18  ;;  %v370_v37 = vunpack.c.l.bf16 %v369_v36  ;;  %v422_v56 = vunpack.c.l.bf16 %v421_v55  ;;  %s859_s7 = scalar_lea.hbm %s858_s28, 8 }
  0x30   : > { %p860_p4 = scmp.ne.s32.totalorder %s858_s28, %s859_s7  ;;  %p865_p8 = scmp.lt.s32.totalorder %s863_s9, %s859_s7 }
  0x32   : > { %307 = vmatpush.bf16.msra.mxu0 %v672_v3  ;;  %326 = vmatpush.bf16.msra.mxu1 %v672_v3  ;;  %v253_v9 = vld [vmem:[#allocation2] sm:$0x1]  ;;  %p861_p5 = pnand %p860_p4, %p1005_p9  ;;  %p866_p10 = por %p865_p8, %p864_p7 }
  0x33   : > { %352 = vmatpush.bf16.msra.mxu2 %v672_v3  ;;  %377 = vmatpush.bf16.msra.mxu3 %v672_v3  ;;  %v256_v10 = vpack.c.bf16 %v253_v9, %v253_v9 }
  0x34   : > { %p862_p6 = pneg %p861_p5 }
  0x36   : > { %308 = vmatpush.bf16.msra.mxu0 %v671_v4  ;;  %327 = vmatpush.bf16.msra.mxu1 %v671_v4  ;;  %p867_p13 = pnand %p866_p10, %p862_p6 }
  0x37   : > { %353 = vmatpush.bf16.msra.mxu2 %v671_v4  ;;  %378 = vmatpush.bf16.msra.mxu3 %v671_v4 }
  0x3a   : > { %309 = vmatpush.bf16.msra.mxu0 %v670_v5  ;;  %328 = vmatpush.bf16.msra.mxu1 %v670_v5 }
  0x3b   : > { %354 = vmatpush.bf16.msra.mxu2 %v670_v5  ;;  %379 = vmatpush.bf16.msra.mxu3 %v670_v5 }
  0x3e   : > { %310 = vmatpush.bf16.msra.mxu0 %v669_v6  ;;  %329 = vmatpush.bf16.msra.mxu1 %v669_v6 }
  0x3f   : > { %355 = vmatpush.bf16.msra.mxu2 %v669_v6  ;;  %380 = vmatpush.bf16.msra.mxu3 %v669_v6 }
  0x42   : > { %311 = vmatpush.bf16.msra.mxu0 %v668_v7  ;;  %330 = vmatpush.bf16.msra.mxu1 %v668_v7 }
  0x43   : > { %356 = vmatpush.bf16.msra.mxu2 %v668_v7  ;;  %381 = vmatpush.bf16.msra.mxu3 %v668_v7 }
  0x46   : > { %312 = vmatpush.bf16.msra.mxu0 %v667_v8  ;;  %331 = vmatpush.bf16.msra.mxu1 %v667_v8 }
  0x47   : > { %357 = vmatpush.bf16.msra.mxu2 %v667_v8  ;;  %382 = vmatpush.bf16.msra.mxu3 %v667_v8 }
  0x49   : > { %313 = vmatmul.bf16.vlgmr.msra.gmra.mxu0 %v256_v10  ;;  %v473_v10 = vld [vmem:[%s1036_s6] sm:$0x8] }
  0x4a   : > { %402 = vmatpush.bf16.msrb.mxu0 %v674_v0  ;;  %427 = vmatpush.bf16.msrb.mxu1 %v674_v0  ;;  %v474_v11 = vunpack.c.l.bf16 %v473_v10 }
  0x4b   : > { %454 = vmatpush.bf16.msrb.mxu2 %v674_v0  ;;  %479 = vmatpush.bf16.msrb.mxu3 %v674_v0 }
  0x4e   : > { %403 = vmatpush.bf16.msrb.mxu0 %v673_v1  ;;  %428 = vmatpush.bf16.msrb.mxu1 %v673_v1 }
  0x4f   : > { %455 = vmatpush.bf16.msrb.mxu2 %v673_v1  ;;  %480 = vmatpush.bf16.msrb.mxu3 %v673_v1  ;;  %v446_v1 = vld [vmem:[%s1036_s6] sm:$0x8]  ;;  %s500_s6 = scalar_lea.sflag [#allocation7], %s1032_s22 }
  0x50   : > { %v447_v2 = vunpack.c.l.bf16 %v446_v1 }
  0x52   : > { %404 = vmatpush.bf16.msrb.mxu0 %v672_v3  ;;  %429 = vmatpush.bf16.msrb.mxu1 %v672_v3 }
  0x53   : > { %456 = vmatpush.bf16.msrb.mxu2 %v672_v3  ;;  %481 = vmatpush.bf16.msrb.mxu3 %v672_v3 }
  0x56   : > { %405 = vmatpush.bf16.msrb.mxu0 %v671_v4  ;;  %430 = vmatpush.bf16.msrb.mxu1 %v671_v4 }
  0x57   : > { %457 = vmatpush.bf16.msrb.mxu2 %v671_v4  ;;  %482 = vmatpush.bf16.msrb.mxu3 %v671_v4 }
  0x5a   : > { %406 = vmatpush.bf16.msrb.mxu0 %v670_v5  ;;  %431 = vmatpush.bf16.msrb.mxu1 %v670_v5 }
  0x5b   : > { %458 = vmatpush.bf16.msrb.mxu2 %v670_v5  ;;  %483 = vmatpush.bf16.msrb.mxu3 %v670_v5 }
  0x5e   : > { %407 = vmatpush.bf16.msrb.mxu0 %v669_v6  ;;  %432 = vmatpush.bf16.msrb.mxu1 %v669_v6 }
  0x5f   : > { %459 = vmatpush.bf16.msrb.mxu2 %v669_v6  ;;  %484 = vmatpush.bf16.msrb.mxu3 %v669_v6 }
  0x62   : > { %408 = vmatpush.bf16.msrb.mxu0 %v668_v7  ;;  %433 = vmatpush.bf16.msrb.mxu1 %v668_v7 }
  0x63   : > { %460 = vmatpush.bf16.msrb.mxu2 %v668_v7  ;;  %485 = vmatpush.bf16.msrb.mxu3 %v668_v7 }
  0x66   : > { %409 = vmatpush.bf16.msrb.mxu0 %v667_v8  ;;  %434 = vmatpush.bf16.msrb.mxu1 %v667_v8 }
  0x67   : > { %461 = vmatpush.bf16.msrb.mxu2 %v667_v8  ;;  %486 = vmatpush.bf16.msrb.mxu3 %v667_v8 }
  0xc6   : > { %v314_v13 = vpop.f32.mrf.mxu0 }
  0xc7   : > { %v318_v14 = vadd.f32 %v314_v13, %v255_v12 }
  0xc9   : > { %743 = vtanh.f32 %v318_v14 }
  0xce   : > { %v316_v15 = vpop.f32.mrf.mxu0 }
  0xcf   : > { %v744_v16 = vpop.eup %743 }
  0xd0   : > { %320 = vst [vmem:[%s1052_s21] sm:$0x1] %v744_v16  ;;  %v323_v17 = vpack.c.bf16 %v744_v16, %v744_v16 }
  0xd2   : > { %332 = vmatmul.bf16.vlgmr.msra.gmra.mxu1 %v323_v17 }
 0x14f   : > { %v333_v20 = vpop.f32.mrf.mxu1 }
 0x150   : > { %v338_v21 = vrot.slane %v333_v20, 7 }
 0x152   : > { %v340_v22 = vadd.f32 %v338_v21, %v322_v19 }
 0x154   : > { %745 = vtanh.f32 %v340_v22 }
 0x157   : > { %v335_v23 = vpop.f32.mrf.mxu1 }
 0x15a   : > { %v746_v24 = vpop.eup %745 }
 0x15b   : > { %342 = vst [vmem:[%s1052_s21] sm:$0x2] %v746_v24  ;;  %v345_v25 = vpack.c.bf16 %v746_v24, %v746_v24 }
 0x15d   : > { %v347_v26 = vshrl.u32 %v345_v25, 16 }
 0x15f   : > { %358 = vmatmul.bf16.vlgmr.msra.gmra.mxu2 %v347_v26 }
 0x1e2   : > { %v359_v29 = vpop.f32.mrf.mxu2 }
 0x1e3   : > { %v364_v30 = vrot.slane %v359_v29, 6 }
 0x1e5   : > { %v366_v31 = vadd.f32 %v364_v30, %v344_v28 }
 0x1e7   : > { %747 = vtanh.f32 %v366_v31 }
 0x1ea   : > { %v361_v32 = vpop.f32.mrf.mxu2 }
 0x1ed   : > { %v748_v33 = vpop.eup %747 }
 0x1ee   : > { %368 = vst [vmem:[%s1052_s21] sm:$0x4] %v748_v33  ;;  %v371_v34 = vpack.c.bf16 %v748_v33, %v748_v33 }
 0x1f0   : > { %v373_v35 = vrot.slane %v371_v34, 1 }
 0x1f2   : > { %383 = vmatmul.bf16.vlgmr.msra.gmra.mxu3 %v373_v35 }
 0x275   : > { %v384_v38 = vpop.f32.mrf.mxu3 }
 0x276   : > { %v389_v39 = vrot.slane %v384_v38, 5 }
 0x278   : > { %v391_v40 = vadd.f32 %v389_v39, %v370_v37 }
 0x27a   : > { %749 = vtanh.f32 %v391_v40 }
 0x27d   : > { %v386_v41 = vpop.f32.mrf.mxu3 }
 0x280   : > { %v750_v42 = vpop.eup %749 }
 0x281   : > { %393 = vst [vmem:[%s1052_s21] sm:$0x8] %v750_v42  ;;  %v396_v43 = vpack.c.bf16 %v750_v42, %v750_v42 }
 0x283   : > { %v398_v44 = vshrl.u32 %v396_v43, 16 }
 0x285   : > { %v400_v45 = vrot.slane %v398_v44, 1 }
 0x287   : > { %410 = vmatmul.bf16.vlgmr.msrb.gmra.mxu0 %v400_v45 }
 0x304   : > { %v411_v48 = vpop.f32.mrf.mxu0 }
 0x305   : > { %v416_v49 = vrot.slane %v411_v48, 4 }
 0x307   : > { %v418_v50 = vadd.f32 %v416_v49, %v395_v47 }
 0x309   : > { %751 = vtanh.f32 %v418_v50 }
 0x30c   : > { %v413_v51 = vpop.f32.mrf.mxu0 }
 0x30f   : > { %v752_v52 = vpop.eup %751 }
 0x310   : > { %420 = vst [vmem:[%s1052_s21] sm:$0x10] %v752_v52  ;;  %v423_v53 = vpack.c.bf16 %v752_v52, %v752_v52 }
 0x312   : > { %v425_v54 = vrot.slane %v423_v53, 2 }
 0x314   : > { %435 = vmatmul.bf16.vlgmr.msrb.gmra.mxu1 %v425_v54 }
 0x391   : > { %v436_v57 = vpop.f32.mrf.mxu1 }
 0x392   : > { %v441_v58 = vrot.slane %v436_v57, 3 }
 0x394   : > { %v443_v59 = vadd.f32 %v441_v58, %v422_v56 }
 0x396   : > { %753 = vtanh.f32 %v443_v59 }
 0x399   : > { %v438_v60 = vpop.f32.mrf.mxu1 }
 0x39c   : > { %v754_v61 = vpop.eup %753 }
 0x39d   : > { %445 = vst [vmem:[%s1052_s21] sm:$0x20] %v754_v61  ;;  %v448_v62 = vpack.c.bf16 %v754_v61, %v754_v61 }
 0x39f   : > { %v450_v63 = vshrl.u32 %v448_v62, 16 }
 0x3a1   : > { %v452_v0 = vrot.slane %v450_v63, 2 }
 0x3a3   : > { %462 = vmatmul.bf16.vlgmr.msrb.gmra.mxu2 %v452_v0 }
 0x426   : > { %v463_v3 = vpop.f32.mrf.mxu2 }
 0x427   : > { %v468_v4 = vrot.slane %v463_v3, 2 }
 0x429   : > { %v470_v5 = vadd.f32 %v468_v4, %v447_v2 }
 0x42b   : > { %755 = vtanh.f32 %v470_v5 }
 0x42e   : > { %v465_v6 = vpop.f32.mrf.mxu2 }
 0x431   : > { %v756_v7 = vpop.eup %755 }
 0x432   : > { %472 = vst [vmem:[%s1052_s21] sm:$0x40] %v756_v7  ;;  %v475_v8 = vpack.c.bf16 %v756_v7, %v756_v7 }
 0x434   : > { %v477_v9 = vrot.slane %v475_v8, 3 }
 0x436   : > { %487 = vmatmul.bf16.vlgmr.msrb.gmra.mxu3 %v477_v9 }
 0x4b9   : > { %v488_v12 = vpop.f32.mrf.mxu3 }
 0x4ba   : > { %v493_v13 = vrot.slane %v488_v12, 1 }
 0x4bc   : > { %v495_v14 = vadd.f32 %v493_v13, %v474_v11 }
 0x4be   : > { %757 = vtanh.f32 %v495_v14 }
 0x4c1   : > { %v490_v15 = vpop.f32.mrf.mxu3 }
 0x4c4   : > { %v758_v16 = vpop.eup %757 }
 0x4c5   : > { %497 = vst [vmem:[%s1052_s21] sm:$0x80] %v758_v16 }
 0x4c6   : > { %498 = vst [vmem:[#allocation2 - $0x7] sm:$0x80] %v758_v16 }
 0x4c7   : > { %870 = shalt.err (!%p867_p13)
}
 0x4c8   : > { %679 = dma.vmem_to_hbm [thread:$0]  (%p1005_p9), %s514_s30, 128, %s516_s5, %s500_s6  }
 0x4c9 PF: > { %s527_s22 = sand.u32 1, %s911_s12   ;;  %p689_p0 = pnand %p624_p12, %p1012_p11 }
 0x4ca   : > { %s528_s18 = scalar_lea.sflag [#allocation7], %s527_s22 }
 0x4cb   : > { %p690_p1 = pneg %p689_p0 }
 0x4cd   : > { %906 = dma.done.wait (%p690_p1), %s528_s18, 128  }
 0x4ce   : > { %908 = vsyncadd (%p690_p1), %s528_s18, 4294967168  ;;  %s22_s17 = sadd.s32 1, %s931_s17   ;;  %s1117_s12 = smov %s915_s13 }
 0x4cf   : > { %p19_p2 = scmp.ge.s32.totalorder %s22_s17, 4   ;;  %s1118_s13 = smov %s919_s14 }
 0x4d0   : > { %s1119_s14 = smov %s1010_s26  ;;  %s1120_s15 = smov %s927_s16 }
 0x4d1   : > { %s1121_s16 = smov %s1123_s20  ;;  %21 = sbr.rel (!%p19_p2) target bundleno = 8 (0x8), region = 94 }
 0x4d6   :  { %534 = vsyncpa [#allocation6], 1 }
 0x4d7   :  { %536 = vsyncpa [#allocation6 + $0x1], 1 }
 0x4d8   :  { %537 = vsyncpa [#allocation9], 1 }
 0x4d9   :  { %539 = vsyncpa [#allocation9 + $0x1], 1 }
 0x4da   :  { %540 = vsyncpa [#allocation7], 1 }
 0x4db   :  { %542 = vsyncpa [#allocation7 + $0x1], 1 }
 0x4dc   :  { %543 = vsyncmov [#allocation4] }
 0x4df   :  { %s544_s25 = vpop.sfrf %543 }
 0x4e0   :  { %p666_p9 = scmp.ne.s32.totalorder %s544_s25, 0 }
 0x4e2   :  { %548 = shalt.err (%p666_p9)  }

</bundles_post_ra>
